<compile_context>
chip_gen: v6e
topology: v6e:2x2x1
jax: 0.10.0
libtpu: 0.0.40
codegen_flags: <defaults>
</compile_context>

<pallas_src>
import functools

import jax
import jax.numpy as jnp
from jax.experimental import pallas as pl
from jax.experimental.pallas import tpu as pltpu

_LANES = 128  # lane width of a vreg / minor tile dim


def _linear1_kernel(x_ref, w_ref, b_ref, o_ref):
    """y = sum_c x[c] * w[c] + b, all VPU, scalars from SMEM.

    x_ref: (inc, TR, 128)  VMEM  - channel-major, lane-dense slab of rows
    w_ref: (inc,)          SMEM  - Linear weights (scalars)
    b_ref: (1,)            SMEM  - Linear bias (scalar)
    o_ref: (TR, 128)       VMEM  - lane-dense output slab
    """
    inc = x_ref.shape[0]
    acc = x_ref[0] * w_ref[0]
    for c in range(1, inc):  # static, tiny (inc == 2)
        acc = acc + x_ref[c] * w_ref[c]
    o_ref[...] = (acc + b_ref[0]).astype(o_ref.dtype)


def _round_up(x, m):
    return ((x + m - 1) // m) * m


def stack_forward(x, weight, bias, *, block_rows=1024):
    """Equivalent of torch: stack(inc).forward(x) with fc1.weight=weight, fc1.bias=bias.

    x:      (..., inc)  float32
    weight: (1, inc)    float32   (torch Linear stores (out_features, in_features))
    bias:   (1,)        float32
    returns (..., 1)    same dtype as x

    block_rows = slab rows (each slab row = 128 logical rows) per grid step.
    Default 1024 -> ~1 MiB of x + 0.5 MiB of y per buffer: large enough to
    amortize the ~0.35 us/step overhead, small enough for every chip's VMEM.
    """
    inc = x.shape[-1]
    assert weight.shape == (1, inc)
    lead = x.shape[:-1]
    n = 1
    for d in lead:
        n *= d

    # ---- wrapper-side layout plumbing (no compute hoisted here) ----------
    # Pad the row count to whole (tr, 128) output tiles, then split channels
    # so the kernel sees lane-dense slabs: xs[c, r, l] = x_row[r*128 + l, c].
    block_rows = max(8, _round_up(block_rows, 8))
    x2d = x.reshape(n, inc)
    r = _round_up(pl.cdiv(n, _LANES), 8)        # slab rows, sublane-aligned
    tr = min(block_rows, r)                     # slab rows per grid step
    r_pad = _round_up(r, tr)
    n_pad = r_pad * _LANES
    if n_pad != n:
        x2d = jnp.pad(x2d, ((0, n_pad - n), (0, 0)))
    xs = x2d.T.reshape(inc, r_pad, _LANES)      # channel-major, lane-dense

    w_vec = weight.reshape(inc).astype(jnp.float32)   # SMEM scalars
    b_vec = bias.reshape(1).astype(jnp.float32)

    grid = (r_pad // tr,)
    out = pl.pallas_call(
        _linear1_kernel,
        out_shape=jax.ShapeDtypeStruct((r_pad, _LANES), x.dtype),
        grid=grid,
        in_specs=[
            pl.BlockSpec((inc, tr, _LANES), lambda i: (0, i, 0)),
            pl.BlockSpec(memory_space=pltpu.MemorySpace.SMEM),
            pl.BlockSpec(memory_space=pltpu.MemorySpace.SMEM),
        ],
        out_specs=pl.BlockSpec((tr, _LANES), lambda i: (i, 0)),
        compiler_params=pltpu.CompilerParams(
            dimension_semantics=("parallel",)),   # shard rows across v7x cores
    )(xs, w_vec, b_vec)

    # Dense slab -> (..., 1); trim the zero-padded tail rows.
    y = out.reshape(n_pad)[:n].reshape(*lead, 1)
    return y


if __name__ == "__main__":
    key = jax.random.PRNGKey(0)
    k_x, k_w, k_b, k_x2 = jax.random.split(key, 4)

    inc = 2
    # Deterministic params in torch Linear's U(-1/sqrt(inc), 1/sqrt(inc)) range.
    bound = 1.0 / (inc ** 0.5)
    weight = jax.random.uniform(k_w, (1, inc), minval=-bound, maxval=bound,
                                dtype=jnp.float32)
    bias = jax.random.uniform(k_b, (1,), minval=-bound, maxval=bound,
                              dtype=jnp.float32)

    # Small shape matching the module's expected usage: (batch, seq, inc).
    x = jax.random.normal(k_x, (2, 8, inc), dtype=jnp.float32)
    y = jax.block_until_ready(stack_forward(x, weight, bias))
    y_ref = x @ weight.T + bias
    assert y.shape == (2, 8, 1), y.shape
    assert jnp.allclose(y, y_ref, atol=1e-5, rtol=1e-5)

    # Second check: exercises multi-block grid, padding and tail trimming,
    # and the jitted wrapper (layout plumbing fused by XLA).
    x2 = jax.random.normal(k_x2, (4, 3000, inc), dtype=jnp.float32)  # 12000 rows
    fwd = jax.jit(stack_forward, static_argnames=("block_rows",))
    y2 = jax.block_until_ready(fwd(x2, weight, bias, block_rows=16))  # grid = 6
    y2_ref = x2 @ weight.T + bias
    assert y2.shape == (4, 3000, 1), y2.shape
    assert jnp.allclose(y2, y2_ref, atol=1e-5, rtol=1e-5)

    print("KERNEL_OK")
</pallas_src>

<mosaic_0001>
module attributes {stable_mosaic.version = 11 : i64} {
  func.func @_linear1_kernel(%arg0: i32, %arg1: memref<2x8x128xf32, #tpu.memory_space<vmem>>, %arg2: memref<2xf32, #tpu.memory_space<smem>>, %arg3: memref<1xf32, #tpu.memory_space<smem>>, %arg4: memref<8x128xf32, #tpu.memory_space<vmem>>) attributes {dimension_semantics = [#tpu.dimension_semantics<parallel>], iteration_bounds = array<i64: 1>, scalar_prefetch = 0 : i64, scratch_operands = 0 : i64, tpu.core_type = #tpu.core_type<tc>, window_params = [{transform_indices = @transform_0, window_bounds = array<i64: 2, 8, 128>}, {transform_indices = @transform_1, window_bounds = array<i64: 2>}, {transform_indices = @transform_2, window_bounds = array<i64: 1>}, {transform_indices = @transform_3, window_bounds = array<i64: 8, 128>}]} {
    %c0 = arith.constant 0 : index
    %c0_0 = arith.constant 0 : index
    %c0_1 = arith.constant 0 : index
    %0 = vector.load %arg1[%c0, %c0_0, %c0_1] : memref<2x8x128xf32, #tpu.memory_space<vmem>>, vector<1x8x128xf32>
    %1 = vector.shape_cast %0 : vector<1x8x128xf32> to vector<8x128xf32>
    %c0_2 = arith.constant 0 : index
    %2 = memref.load %arg2[%c0_2] : memref<2xf32, #tpu.memory_space<smem>>
    %3 = vector.broadcast %2 : f32 to vector<8x128xf32>
    %4 = arith.mulf %1, %3 : vector<8x128xf32>
    %c1 = arith.constant 1 : index
    %c0_3 = arith.constant 0 : index
    %c0_4 = arith.constant 0 : index
    %5 = vector.load %arg1[%c1, %c0_3, %c0_4] : memref<2x8x128xf32, #tpu.memory_space<vmem>>, vector<1x8x128xf32>
    %6 = vector.shape_cast %5 : vector<1x8x128xf32> to vector<8x128xf32>
    %c1_5 = arith.constant 1 : index
    %7 = memref.load %arg2[%c1_5] : memref<2xf32, #tpu.memory_space<smem>>
    %8 = vector.broadcast %7 : f32 to vector<8x128xf32>
    %9 = arith.mulf %6, %8 : vector<8x128xf32>
    %10 = arith.addf %4, %9 : vector<8x128xf32>
    %c0_6 = arith.constant 0 : index
    %11 = memref.load %arg3[%c0_6] : memref<1xf32, #tpu.memory_space<smem>>
    %12 = vector.broadcast %11 : f32 to vector<8x128xf32>
    %13 = arith.addf %10, %12 : vector<8x128xf32>
    %c0_7 = arith.constant 0 : index
    %c0_8 = arith.constant 0 : index
    %14 = vector.load %arg4[%c0_7, %c0_8] : memref<8x128xf32, #tpu.memory_space<vmem>>, vector<8x128xf32>
    tpu.vector_store %arg4[%c0_7, %c0_8], %13 {strides = array<i32>} : memref<8x128xf32, #tpu.memory_space<vmem>>, vector<8x128xf32>,
    return
  }
  func.func @transform_0(%arg0: i32) -> (i32, i32, i32) {
    %c0_i32 = arith.constant 0 : i32
    %c0_i32_0 = arith.constant 0 : i32
    %c0_i32_1 = arith.constant 0 : i32
    return %c0_i32, %arg0, %c0_i32_0 : i32, i32, i32
  }
  func.func @transform_1(%arg0: i32) -> i32 {
    %c0_i32 = arith.constant 0 : i32
    %c0_i32_0 = arith.constant 0 : i32
    return %c0_i32 : i32
  }
  func.func @transform_2(%arg0: i32) -> i32 {
    %c0_i32 = arith.constant 0 : i32
    %c0_i32_0 = arith.constant 0 : i32
    return %c0_i32 : i32
  }
  func.func @transform_3(%arg0: i32) -> (i32, i32) {
    %c0_i32 = arith.constant 0 : i32
    %c0_i32_0 = arith.constant 0 : i32
    return %arg0, %c0_i32 : i32, i32
  }
}

</mosaic_0001>

<bundles_post_ra>
// kernel: tpu_custom_call.1
= control target key start
LH: loop header
LB: loop body
LE: loop exit
PB: predicated region body
PF: predicated region fallthrough
CT: control target
= control target key end

     0   :  { %9 = vsyncpa [#allocation4], 0  ;;  %s174_s0 = inlined_call_operand.hbm [shape: f32[2,8,128], index: 0, kind: input, shape index: {}]   ;;  %s175_s1 = inlined_call_operand.vmem [shape: f32[2], index: 1, kind: input, shape index: {}]   ;;  %s176_s2 = inlined_call_operand.<no memory space> [shape: f32[1], index: 2, kind: input, shape index: {}]   ;;  %s177_s3 = inlined_call_operand.hbm [shape: f32[8,128], index: 3, kind: output, shape index: {}]  }
   0x1   :  { %10 = vsyncpa [#allocation6], 0 }
   0x2   :  { %11 = vsyncpa [#allocation5], 0  ;;  %s137_s12 = smov [#allocation3]   ;;  %s30_s16 = sshll.u32 %s175_s1, 4  ;;  %s31_s16 = int_to_ptr.vmem [resolvable:$true] %s30_s16 }
   0x3   :  { %s17_s13 = sshll.u32 %s137_s12, 4  ;;  %s18_s13 = int_to_ptr.vmem [resolvable:$true] %s17_s13 }
   0x4   :  { %s87_s17 = scalar_lea.vmem %s18_s13, 256  ;;  %p92_p1 = scmp.lt.s32.totalorder %s18_s13, %s18_s13 }
   0x5   :  { %p88_p0 = scmp.ne.s32.totalorder %s18_s13, %s87_s17  ;;  %p93_p2 = scmp.lt.s32.totalorder %s87_s17, %s87_s17 }
   0x7   :  { %p94_p3 = por %p93_p2, %p92_p1 }
   0x9   :  { %p95_p4 = pnand %p94_p3, %p88_p0 }
   0xb   :  { %98 = shalt.err (!%p95_p4)
}
   0xc   :  { %s138_s18 = smov 128   ;;  %s139_s19 = smov 8  }
   0xd   :  { %23 = dma.hbm_to_vmem [thread:$0]  %s174_s0, 256, %s18_s13, [#allocation4], %s138_s18, %s138_s18, %s139_s19  }
   0xe   :  { %s99_s22 = scalar_lea.vmem %s31_s16, 16  ;;  %p104_p6 = scmp.lt.s32.totalorder %s31_s16, %s31_s16 }
   0xf   :  { %p100_p5 = scmp.ne.s32.totalorder %s31_s16, %s99_s22  ;;  %p105_p7 = scmp.lt.s32.totalorder %s99_s22, %s99_s22 }
  0x11   :  { %p106_p8 = por %p105_p7, %p104_p6 }
  0x13   :  { %p107_p9 = pnand %p106_p8, %p100_p5 }
  0x15   :  { %110 = shalt.err (!%p107_p9)
}
  0x16   :  { %s140_s1 = smov [#allocation7]  }
  0x17   :  { %33 = dma.vmem_to_smem %s31_s16, 16, %s140_s1, [#allocation6]  }
  0x18   :  { %131 = dma.done.wait [#allocation4], 256  }
  0x19   :  { %132 = vsyncadd [#allocation4], 4294967040 }
  0x1a   :  { %133 = dma.done.wait [#allocation6], 16  }
  0x1b   :  { %134 = vsyncadd [#allocation6], 4294967280 }
  0x1c   :  { %42 = sfence }
  0x1d   :  { %s44_s23 = sld [smem:[#allocation7]]  ;;  %v43_v0 = vld [vmem:[#allocation3] sm:$0xff]  ;;  %v48_v1 = vld [vmem:[#allocation3 + $0x8] sm:$0xff]  ;;  %v54_v6 = vstv %s176_s2  ;;  %s141_s26 = smov [#allocation8]  }
  0x1e   :  { %s73_s24 = sld [smem:[#allocation7 + $0x1]]  ;;  %s63_s27 = sshll.u32 %s141_s26, 4  ;;  %s64_s27 = int_to_ptr.vmem [resolvable:$true] %s63_s27 }
  0x1f   :  { %s111_s28 = scalar_lea.vmem %s64_s27, 128  ;;  %p116_p11 = scmp.lt.s32.totalorder %s64_s27, %s64_s27 }
  0x20   :  { %p112_p10 = scmp.ne.s32.totalorder %s64_s27, %s111_s28  ;;  %p117_p12 = scmp.lt.s32.totalorder %s111_s28, %s111_s28 }
  0x22   :  { %p118_p13 = por %p117_p12, %p116_p11 }
  0x23   :  { %v45_v2 = vstv %s44_s23 }
  0x24   :  { %v46_v3 = vmul.f32 %v45_v2, %v43_v0  ;;  %v50_v4 = vstv %s73_s24  ;;  %p119_p0 = pnand %p118_p13, %p112_p10 }
  0x25   :  { %v51_v5 = vmul.f32 %v50_v4, %v48_v1 }
  0x27   :  { %v52_v7 = vadd.f32 %v51_v5, %v46_v3 }
  0x29   :  { %v55_v8 = vadd.f32 %v54_v6, %v52_v7 }
  0x2b   :  { %56 = vst [vmem:[#allocation8] sm:$0xff] %v55_v8 }
  0x2c   :  { %122 = shalt.err (!%p119_p0)
}
  0x2d   :  { %66 = dma.vmem_to_hbm [thread:$0]  %s64_s27, 128, %s177_s3, [#allocation5]  }
  0x2e   :  { %135 = dma.done.wait [#allocation5], 128  }
  0x2f   :  { %136 = vsyncadd [#allocation5], 4294967168 }
  0x30   :  { %70 = vsyncpa [#allocation4], 1 }
  0x31   :  { %71 = vsyncpa [#allocation5], 1 }
  0x32   :  { %72 = vsyncpa [#allocation6], 1 }

</bundles_post_ra>
